<compile_context>
chip_gen: v7x
topology: tpu7x:2x2x1
jax: 0.10.0
libtpu: 0.0.40
codegen_flags: <defaults>
</compile_context>

<pallas_src>
import functools

import jax
import jax.numpy as jnp
import numpy as np
from jax.experimental import pallas as pl
from jax.experimental.pallas import tpu as pltpu


def _round_up(x, m):
    return ((x + m - 1) // m) * m


def _choose_tiles(n_pad):
    """Pick (row tile tm, contraction tile tk); n_pad is a multiple of 256."""
    tk = 256
    for cand in (1024, 512, 256):
        if n_pad % cand == 0:
            tk = cand
            break
    tm = tk
    # keep >= 2 row tiles so both v7x TensorCores get work (harmless on v5e/v6e)
    while n_pad // tm < 2 and tm > 128:
        tm //= 2
    return tm, tk


def _pad2d(a, rows, cols, dtype):
    out = jnp.zeros((rows, cols), dtype)
    return out.at[: a.shape[0], : a.shape[1]].set(a.astype(dtype))


# ---------------------------------------------------------------------------
# Kernel 1: fused GCN layer
#   out[i] = relu( d[i] * ( A_sl[i,:] @ (d * H) ) @ W + b )
# ---------------------------------------------------------------------------
def _gcn_layer_kernel(a_ref, x_ref, d_ref, w_ref, b_ref, out_ref, acc_ref, *, tm, tk):
    i = pl.program_id(0)
    k = pl.program_id(1)

    @pl.when(k == 0)
    def _init():
        acc_ref[...] = jnp.zeros_like(acc_ref)

    # Aggregation at the input width with f32 accumulation.  H is VMEM-resident;
    # slice the k-tile rows and pre-scale them by d^{-1/2}.
    off_k = pl.multiple_of(k * tk, tk)
    h_blk = x_ref[pl.ds(off_k, tk), :].astype(jnp.float32)        # (tk, c_in)
    d_k = d_ref[pl.ds(off_k, tk), :]                              # (tk, 1) f32
    h_scaled = (h_blk * d_k).astype(jnp.bfloat16)
    # int8 counts -> bf16 on the VPU (two-step cast keeps the lowering simple)
    a_blk = a_ref[...].astype(jnp.float32).astype(jnp.bfloat16)   # (tm, tk)
    acc_ref[...] += jnp.dot(a_blk, h_scaled, preferred_element_type=jnp.float32)

    @pl.when(k == pl.num_programs(1) - 1)
    def _finalize():
        off_i = pl.multiple_of(i * tm, tm)
        d_i = d_ref[pl.ds(off_i, tm), :]                          # (tm, 1) f32
        agg = acc_ref[...] * d_i                                  # row scaling, f32
        # cheap epilogue projection kept in f32 for accuracy
        h = jnp.dot(agg, w_ref[...], preferred_element_type=jnp.float32)
        h = h + b_ref[...]
        out_ref[...] = jnp.maximum(h, 0.0).astype(out_ref.dtype)


def _gcn_layer(a_sl, h_in, d_inv_sqrt, w, b, *, tm, tk):
    n_pad = a_sl.shape[0]
    c_in = h_in.shape[1]
    c_out = w.shape[1]
    ni, nk = n_pad // tm, n_pad // tk

    vmem_est = (2 * tm * tk                      # int8 A tiles (double buffered)
                + 2 * n_pad * c_in * 2           # resident H (bf16)
                + 2 * n_pad * 4                  # resident d^{-1/2}
                + 2 * c_in * c_out * 4           # resident W (f32)
                + 2 * c_out * 4                  # resident b
                + 2 * tm * c_out * 2             # output tiles
                + tm * c_in * 4)                 # f32 accumulator scratch
    vmem_limit = int(min(max(2 * vmem_est, 32 * 1024 * 1024), 64 * 1024 * 1024))

    cost = pl.CostEstimate(
        flops=2 * n_pad * n_pad * c_in + 2 * n_pad * c_in * c_out,
        transcendentals=0,
        bytes_accessed=(n_pad * n_pad            # int8 A, read once
                        + n_pad * c_in * 2       # resident H, read once
                        + c_in * c_out * 4 + n_pad * 4
                        + n_pad * c_out * 2),
    )

    kernel = functools.partial(_gcn_layer_kernel, tm=tm, tk=tk)
    return pl.pallas_call(
        kernel,
        out_shape=jax.ShapeDtypeStruct((n_pad, c_out), jnp.bfloat16),
        grid_spec=pltpu.PrefetchScalarGridSpec(
            num_scalar_prefetch=0,
            grid=(ni, nk),
            in_specs=[
                pl.BlockSpec((tm, tk), lambda i, k: (i, k)),        # A_sl tile (int8)
                pl.BlockSpec((n_pad, c_in), lambda i, k: (0, 0)),   # H resident
                pl.BlockSpec((n_pad, 1), lambda i, k: (0, 0)),      # d^{-1/2} resident
                pl.BlockSpec((c_in, c_out), lambda i, k: (0, 0)),   # W resident
                pl.BlockSpec((1, c_out), lambda i, k: (0, 0)),      # b resident
            ],
            out_specs=pl.BlockSpec((tm, c_out), lambda i, k: (i, 0)),
            scratch_shapes=[pltpu.VMEM((tm, c_in), jnp.float32)],
        ),
        compiler_params=pltpu.CompilerParams(
            dimension_semantics=("parallel", "arbitrary"),
            vmem_limit_bytes=vmem_limit),
        cost_estimate=cost,
    )(a_sl, h_in, d_inv_sqrt, w, b)


# ---------------------------------------------------------------------------
# Kernel 2: global mean pool   out = (P_onehot @ H) * (1/counts)
# ---------------------------------------------------------------------------
def _mean_pool_kernel(p_ref, h_ref, inv_ref, out_ref):
    k = pl.program_id(0)

    @pl.when(k == 0)
    def _init():
        out_ref[...] = jnp.zeros_like(out_ref)

    out_ref[...] += jnp.dot(p_ref[...], h_ref[...],
                            preferred_element_type=jnp.float32)

    @pl.when(k == pl.num_programs(0) - 1)
    def _finalize():
        out_ref[...] *= inv_ref[...]            # exact f32 1/count scaling


def _mean_pool(p_onehot, h, inv_counts, *, tk):
    g_pad, n_pad = p_onehot.shape
    c_out = h.shape[1]
    return pl.pallas_call(
        _mean_pool_kernel,
        out_shape=jax.ShapeDtypeStruct((g_pad, c_out), jnp.float32),
        grid_spec=pltpu.PrefetchScalarGridSpec(
            num_scalar_prefetch=0,
            grid=(n_pad // tk,),
            in_specs=[
                pl.BlockSpec((g_pad, tk), lambda k: (0, k)),
                pl.BlockSpec((tk, c_out), lambda k: (k, 0)),
                pl.BlockSpec((g_pad, 1), lambda k: (0, 0)),
            ],
            out_specs=pl.BlockSpec((g_pad, c_out), lambda k: (0, 0)),
        ),
        compiler_params=pltpu.CompilerParams(
            dimension_semantics=("arbitrary",)),
    )(p_onehot, h, inv_counts)


# ---------------------------------------------------------------------------
# Forward pass (glue + kernels)
# ---------------------------------------------------------------------------
@functools.partial(jax.jit, static_argnums=(4,))
def gcn_encoder_forward(x, edge_index, batch, params, num_graphs):
    """x: (N, F_in) f32, edge_index: (2, E) i32 [src; dst], batch: (N,) i32."""
    n, f_in = x.shape
    out_dim = params["w2"].shape[1]

    n_pad = _round_up(max(n, 256), 256)
    tm, tk = _choose_tiles(n_pad)
    f_in_p = _round_up(f_in, 128)
    hidden_p = _round_up(params["w1"].shape[1], 128)
    out_p = _round_up(out_dim, 128)
    g_pad = _round_up(num_graphs, 16)

    src = edge_index[0].astype(jnp.int32)
    dst = edge_index[1].astype(jnp.int32)
    idx = jnp.arange(n, dtype=jnp.int32)
    all_src = jnp.concatenate([src, idx])        # edges + self loops (real nodes only)
    all_dst = jnp.concatenate([dst, idx])

    # A_sl = A + I as int8 edge counts (duplicate edges sum, as in PyG gcn_norm).
    # Single scatter pass; normalization happens inside the kernel via d^{-1/2}.
    a_sl = jnp.zeros((n_pad, n_pad), jnp.int8).at[all_dst, all_src].add(
        jnp.ones_like(all_dst, dtype=jnp.int8))
    deg = jnp.zeros((n_pad,), jnp.float32).at[all_dst].add(1.0)      # in-deg + self loop
    d_inv_sqrt = jnp.where(deg > 0, 1.0 / jnp.sqrt(deg), 0.0).reshape(n_pad, 1)

    # mean-pool: exact 0/1 bf16 one-hot + f32 1/count; padded nodes get batch id -1
    batch_i = batch.astype(jnp.int32)
    batch_pad = jnp.full((n_pad,), -1, jnp.int32).at[:n].set(batch_i)
    p_onehot = (batch_pad[None, :] ==
                jnp.arange(g_pad, dtype=jnp.int32)[:, None]).astype(jnp.bfloat16)
    counts = jnp.zeros((g_pad,), jnp.float32).at[batch_i].add(1.0)
    inv_counts = (1.0 / jnp.maximum(counts, 1.0)).reshape(g_pad, 1)

    # features/weights padded to lane-dense multiples of 128
    x_p = _pad2d(x, n_pad, f_in_p, jnp.bfloat16)
    w1_p = _pad2d(params["w1"], f_in_p, hidden_p, jnp.float32)
    b1_p = _pad2d(params["b1"].reshape(1, -1), 1, hidden_p, jnp.float32)
    w2_p = _pad2d(params["w2"], hidden_p, out_p, jnp.float32)
    b2_p = _pad2d(params["b2"].reshape(1, -1), 1, out_p, jnp.float32)

    h1 = _gcn_layer(a_sl, x_p, d_inv_sqrt, w1_p, b1_p, tm=tm, tk=tk)   # relu(GCNConv1)
    h2 = _gcn_layer(a_sl, h1, d_inv_sqrt, w2_p, b2_p, tm=tm, tk=tk)    # relu(GCNConv2)
    pooled = _mean_pool(p_onehot, h2, inv_counts, tk=tk)               # global_mean_pool
    return pooled[:num_graphs, :out_dim]


def init_params(key, input_dim, hidden_dim, output_dim):
    k1, k2, k3, k4 = jax.random.split(key, 4)
    s1 = float(np.sqrt(6.0 / (input_dim + hidden_dim)))
    s2 = float(np.sqrt(6.0 / (hidden_dim + output_dim)))
    return {
        "w1": jax.random.uniform(k1, (input_dim, hidden_dim), jnp.float32, -s1, s1),
        "b1": 0.1 * jax.random.normal(k3, (hidden_dim,), jnp.float32),
        "w2": jax.random.uniform(k2, (hidden_dim, output_dim), jnp.float32, -s2, s2),
        "b2": 0.1 * jax.random.normal(k4, (output_dim,), jnp.float32),
    }


def _reference_forward(x, edge_index, batch, params, num_graphs):
    """Plain-JAX f32 reference matching PyG GCNConv+relu x2 + global_mean_pool."""
    n = x.shape[0]
    src, dst = edge_index[0], edge_index[1]
    a = jnp.zeros((n, n), jnp.float32).at[dst, src].add(1.0)
    a = a.at[jnp.arange(n), jnp.arange(n)].add(1.0)
    deg = jnp.sum(a, axis=1)
    dinv = jnp.where(deg > 0, 1.0 / jnp.sqrt(deg), 0.0)
    a_hat = dinv[:, None] * a * dinv[None, :]
    h1 = jnp.maximum(a_hat @ (x @ params["w1"]) + params["b1"], 0.0)
    h2 = jnp.maximum(a_hat @ (h1 @ params["w2"]) + params["b2"], 0.0)
    one_hot = (batch[None, :] == jnp.arange(num_graphs)[:, None]).astype(jnp.float32)
    cnt = jnp.maximum(one_hot.sum(axis=1, keepdims=True), 1.0)
    return (one_hot / cnt) @ h2


if __name__ == "__main__":
    key = jax.random.PRNGKey(0)
    kx, kp = jax.random.split(key)

    # small graph batch: 2 graphs x 16 nodes = 32 nodes
    num_graphs = 2
    nodes_per_graph = 16
    n = num_graphs * nodes_per_graph
    input_dim, hidden_dim, output_dim = 16, 128, 64   # module defaults: hidden=128, out=64

    x = jax.random.normal(kx, (n, input_dim), jnp.float32)
    batch = jnp.repeat(jnp.arange(num_graphs, dtype=jnp.int32), nodes_per_graph)

    # deterministic edges: bidirectional ring within each graph
    src_list, dst_list = [], []
    for g in range(num_graphs):
        base = g * nodes_per_graph
        for i in range(nodes_per_graph):
            u = base + i
            v = base + (i + 1) % nodes_per_graph
            src_list += [u, v]
            dst_list += [v, u]
    edge_index = jnp.array([src_list, dst_list], dtype=jnp.int32)

    params = init_params(kp, input_dim, hidden_dim, output_dim)

    out = gcn_encoder_forward(x, edge_index, batch, params, num_graphs)
    out = jax.block_until_ready(out)
    assert out.shape == (num_graphs, output_dim)

    ref = _reference_forward(x, edge_index, batch, params, num_graphs)
    # bf16 aggregation inputs + f32 accumulation / f32 projection: 5e-2 tolerance
    if not np.allclose(np.asarray(out), np.asarray(ref), rtol=5e-2, atol=5e-2):
        max_err = float(np.max(np.abs(np.asarray(out) - np.asarray(ref))))
        raise AssertionError(f"kernel mismatch vs reference, max|err|={max_err}")

    print("KERNEL_OK")
</pallas_src>

<mosaic_0001>
module attributes {stable_mosaic.version = 11 : i64} {
  func.func private @main(%arg0: i32) attributes {dimension_semantics = [#tpu.dimension_semantics<core_parallel>], iteration_bounds = array<i64: 2>, tpu.core_type = #tpu.core_type<sc_scalar_subcore>, window_params = []} {
    return
  }
}

module attributes {stable_mosaic.version = 11 : i64} {
  func.func private @main(%arg0: i32) attributes {dimension_semantics = [#tpu.dimension_semantics<core_parallel>], iteration_bounds = array<i64: 2>, tpu.core_type = #tpu.core_type<sc_scalar_subcore>, window_params = []} {
    return
  }
}

module attributes {stable_mosaic.version = 11 : i64} {
  func.func @_gcn_layer_kernel(%arg0: i32, %arg1: i32, %arg2: memref<128x256xi8, #tpu.memory_space<vmem>>, %arg3: memref<256x128xbf16, #tpu.memory_space<vmem>>, %arg4: memref<256x1xf32, #tpu.memory_space<vmem>>, %arg5: memref<128x128xf32, #tpu.memory_space<vmem>>, %arg6: memref<1x128xf32, #tpu.memory_space<vmem>>, %arg7: memref<128x128xbf16, #tpu.memory_space<vmem>>, %arg8: memref<128x128xf32, #tpu.memory_space<vmem>>) attributes {dimension_semantics = [#tpu.dimension_semantics<parallel>, #tpu.dimension_semantics<arbitrary>], iteration_bounds = array<i64: 2, 1>, scalar_prefetch = 0 : i64, scratch_operands = 1 : i64, tpu.core_type = #tpu.core_type<tc>, window_params = [{transform_indices = @transform_0, window_bounds = array<i64: 128, 256>}, {pipeline_mode = #tpu.pipeline_mode<synchronous>, transform_indices = @transform_1, window_bounds = array<i64: 256, 128>}, {pipeline_mode = #tpu.pipeline_mode<synchronous>, transform_indices = @transform_2, window_bounds = array<i64: 256, 1>}, {pipeline_mode = #tpu.pipeline_mode<synchronous>, transform_indices = @transform_3, window_bounds = array<i64: 128, 128>}, {pipeline_mode = #tpu.pipeline_mode<synchronous>, transform_indices = @transform_4, window_bounds = array<i64: 1, 128>}, {transform_indices = @transform_5, window_bounds = array<i64: 128, 128>}]} {
    %c0_i32 = arith.constant 0 : i32
    %0 = arith.cmpi eq, %arg1, %c0_i32 : i32
    %1 = arith.extui %0 : i1 to i32
    %c0_i32_0 = arith.constant 0 : i32
    %2 = arith.cmpi ne, %1, %c0_i32_0 : i32
    scf.if %2 {
      %cst_10 = arith.constant 0.000000e+00 : f32
      %23 = vector.broadcast %cst_10 : f32 to vector<128x128xf32>
      %c0_11 = arith.constant 0 : index
      %c0_12 = arith.constant 0 : index
      %24 = vector.load %arg8[%c0_11, %c0_12] : memref<128x128xf32, #tpu.memory_space<vmem>>, vector<128x128xf32>
      tpu.vector_store %arg8[%c0_11, %c0_12], %23 {strides = array<i32>} : memref<128x128xf32, #tpu.memory_space<vmem>>, vector<128x128xf32>,
    } else {
    }
    %c256_i32 = arith.constant 256 : i32
    %3 = arith.muli %arg1, %c256_i32 : i32
    %4 = tpu.assume_multiple %3, 256 : i32
    %5 = arith.index_cast %4 : i32 to index
    %c0 = arith.constant 0 : index
    %6 = vector.load %arg3[%5, %c0] : memref<256x128xbf16, #tpu.memory_space<vmem>>, vector<256x128xbf16>
    %7 = arith.extf %6 : vector<256x128xbf16> to vector<256x128xf32>
    %8 = arith.index_cast %4 : i32 to index
    %c0_1 = arith.constant 0 : index
    %9 = vector.load %arg4[%8, %c0_1] : memref<256x1xf32, #tpu.memory_space<vmem>>, vector<256x1xf32>
    %10 = vector.broadcast %9 : vector<256x1xf32> to vector<256x128xf32>
    %11 = arith.mulf %7, %10 : vector<256x128xf32>
    %12 = arith.truncf %11 : vector<256x128xf32> to vector<256x128xbf16>
    %c0_2 = arith.constant 0 : index
    %c0_3 = arith.constant 0 : index
    %13 = vector.load %arg2[%c0_2, %c0_3] : memref<128x256xi8, #tpu.memory_space<vmem>>, vector<128x256xi8>
    %14 = arith.sitofp %13 : vector<128x256xi8> to vector<128x256xf32>
    %15 = arith.truncf %14 : vector<128x256xf32> to vector<128x256xbf16>
    %c0_4 = arith.constant 0 : index
    %c0_5 = arith.constant 0 : index
    %16 = vector.load %arg8[%c0_4, %c0_5] : memref<128x128xf32, #tpu.memory_space<vmem>>, vector<128x128xf32>
    %cst = arith.constant dense<0.000000e+00> : vector<128x128xf32>
    %17 = tpu.matmul %15, %12, %cst {dimension_numbers = #tpu.dot_dimension_numbers<[1], [0], [0], [1], [0, 0, 1, 1], [], []>} : vector<128x256xbf16>, vector<256x128xbf16>, vector<128x128xf32> -> vector<128x128xf32>
    %18 = arith.addf %16, %17 : vector<128x128xf32>
    %c0_6 = arith.constant 0 : index
    %c0_7 = arith.constant 0 : index
    %19 = vector.load %arg8[%c0_6, %c0_7] : memref<128x128xf32, #tpu.memory_space<vmem>>, vector<128x128xf32>
    tpu.vector_store %arg8[%c0_6, %c0_7], %18 {strides = array<i32>} : memref<128x128xf32, #tpu.memory_space<vmem>>, vector<128x128xf32>,
    %c0_i32_8 = arith.constant 0 : i32
    %20 = arith.cmpi eq, %arg1, %c0_i32_8 : i32
    %21 = arith.extui %20 : i1 to i32
    %c0_i32_9 = arith.constant 0 : i32
    %22 = arith.cmpi ne, %21, %c0_i32_9 : i32
    scf.if %22 {
      %c128_i32 = arith.constant 128 : i32
      %23 = arith.muli %arg0, %c128_i32 : i32
      %24 = tpu.assume_multiple %23, 128 : i32
      %25 = arith.index_cast %24 : i32 to index
      %c0_10 = arith.constant 0 : index
      %26 = vector.load %arg4[%25, %c0_10] : memref<256x1xf32, #tpu.memory_space<vmem>>, vector<128x1xf32>
      %c0_11 = arith.constant 0 : index
      %c0_12 = arith.constant 0 : index
      %27 = vector.load %arg8[%c0_11, %c0_12] : memref<128x128xf32, #tpu.memory_space<vmem>>, vector<128x128xf32>
      %28 = vector.broadcast %26 : vector<128x1xf32> to vector<128x128xf32>
      %29 = arith.mulf %27, %28 : vector<128x128xf32>
      %c0_13 = arith.constant 0 : index
      %c0_14 = arith.constant 0 : index
      %30 = vector.load %arg5[%c0_13, %c0_14] : memref<128x128xf32, #tpu.memory_space<vmem>>, vector<128x128xf32>
      %cst_15 = arith.constant dense<0.000000e+00> : vector<128x128xf32>
      %31 = tpu.matmul %29, %30, %cst_15 {dimension_numbers = #tpu.dot_dimension_numbers<[1], [0], [0], [1], [0, 0, 1, 1], [], []>} : vector<128x128xf32>, vector<128x128xf32>, vector<128x128xf32> -> vector<128x128xf32>
      %c0_16 = arith.constant 0 : index
      %c0_17 = arith.constant 0 : index
      %32 = vector.load %arg6[%c0_16, %c0_17] : memref<1x128xf32, #tpu.memory_space<vmem>>, vector<1x128xf32>
      %33 = vector.broadcast %32 : vector<1x128xf32> to vector<128x128xf32>
      %34 = arith.addf %31, %33 : vector<128x128xf32>
      %cst_18 = arith.constant 0.000000e+00 : f32
      %35 = vector.broadcast %cst_18 : f32 to vector<128x128xf32>
      %36 = arith.maximumf %34, %35 : vector<128x128xf32>
      %37 = arith.truncf %36 : vector<128x128xf32> to vector<128x128xbf16>
      %c0_19 = arith.constant 0 : index
      %c0_20 = arith.constant 0 : index
      %38 = vector.load %arg7[%c0_19, %c0_20] : memref<128x128xbf16, #tpu.memory_space<vmem>>, vector<128x128xbf16>
      tpu.vector_store %arg7[%c0_19, %c0_20], %37 {strides = array<i32>} : memref<128x128xbf16, #tpu.memory_space<vmem>>, vector<128x128xbf16>,
    } else {
    }
    return
  }
  func.func @transform_0(%arg0: i32, %arg1: i32) -> (i32, i32) {
    %c0_i32 = arith.constant 0 : i32
    return %arg0, %arg1 : i32, i32
  }
  func.func @transform_1(%arg0: i32, %arg1: i32) -> (i32, i32) {
    %c0_i32 = arith.constant 0 : i32
    %c0_i32_0 = arith.constant 0 : i32
    %c0_i32_1 = arith.constant 0 : i32
    return %c0_i32, %c0_i32_0 : i32, i32
  }
  func.func @transform_2(%arg0: i32, %arg1: i32) -> (i32, i32) {
    %c0_i32 = arith.constant 0 : i32
    %c0_i32_0 = arith.constant 0 : i32
    %c0_i32_1 = arith.constant 0 : i32
    return %c0_i32, %c0_i32_0 : i32, i32
  }
  func.func @transform_3(%arg0: i32, %arg1: i32) -> (i32, i32) {
    %c0_i32 = arith.constant 0 : i32
    %c0_i32_0 = arith.constant 0 : i32
    %c0_i32_1 = arith.constant 0 : i32
    return %c0_i32, %c0_i32_0 : i32, i32
  }
  func.func @transform_4(%arg0: i32, %arg1: i32) -> (i32, i32) {
    %c0_i32 = arith.constant 0 : i32
    %c0_i32_0 = arith.constant 0 : i32
    %c0_i32_1 = arith.constant 0 : i32
    return %c0_i32, %c0_i32_0 : i32, i32
  }
  func.func @transform_5(%arg0: i32, %arg1: i32) -> (i32, i32) {
    %c0_i32 = arith.constant 0 : i32
    %c0_i32_0 = arith.constant 0 : i32
    return %arg0, %c0_i32 : i32, i32
  }
}

module attributes {stable_mosaic.version = 11 : i64} {
  func.func @_mean_pool_kernel(%arg0: i32, %arg1: memref<16x256xbf16, #tpu.memory_space<vmem>>, %arg2: memref<256x128xbf16, #tpu.memory_space<vmem>>, %arg3: memref<16x1xf32, #tpu.memory_space<vmem>>, %arg4: memref<16x128xf32, #tpu.memory_space<vmem>>) attributes {dimension_semantics = [#tpu.dimension_semantics<arbitrary>], iteration_bounds = array<i64: 1>, scalar_prefetch = 0 : i64, scratch_operands = 0 : i64, tpu.core_type = #tpu.core_type<tc>, window_params = [{transform_indices = @transform_0, window_bounds = array<i64: 16, 256>}, {transform_indices = @transform_1, window_bounds = array<i64: 256, 128>}, {pipeline_mode = #tpu.pipeline_mode<synchronous>, transform_indices = @transform_2, window_bounds = array<i64: 16, 1>}, {pipeline_mode = #tpu.pipeline_mode<synchronous>, transform_indices = @transform_3, window_bounds = array<i64: 16, 128>}]} {
    %c0_i32 = arith.constant 0 : i32
    %0 = arith.cmpi eq, %arg0, %c0_i32 : i32
    %1 = arith.extui %0 : i1 to i32
    %c0_i32_0 = arith.constant 0 : i32
    %2 = arith.cmpi ne, %1, %c0_i32_0 : i32
    scf.if %2 {
      %cst_10 = arith.constant 0.000000e+00 : f32
      %12 = vector.broadcast %cst_10 : f32 to vector<16x128xf32>
      %c0_11 = arith.constant 0 : index
      %c0_12 = arith.constant 0 : index
      %13 = vector.load %arg4[%c0_11, %c0_12] : memref<16x128xf32, #tpu.memory_space<vmem>>, vector<16x128xf32>
      tpu.vector_store %arg4[%c0_11, %c0_12], %12 {strides = array<i32>} : memref<16x128xf32, #tpu.memory_space<vmem>>, vector<16x128xf32>,
    } else {
    }
    %c0 = arith.constant 0 : index
    %c0_1 = arith.constant 0 : index
    %3 = vector.load %arg4[%c0, %c0_1] : memref<16x128xf32, #tpu.memory_space<vmem>>, vector<16x128xf32>
    %c0_2 = arith.constant 0 : index
    %c0_3 = arith.constant 0 : index
    %4 = vector.load %arg1[%c0_2, %c0_3] : memref<16x256xbf16, #tpu.memory_space<vmem>>, vector<16x256xbf16>
    %c0_4 = arith.constant 0 : index
    %c0_5 = arith.constant 0 : index
    %5 = vector.load %arg2[%c0_4, %c0_5] : memref<256x128xbf16, #tpu.memory_space<vmem>>, vector<256x128xbf16>
    %cst = arith.constant dense<0.000000e+00> : vector<16x128xf32>
    %6 = tpu.matmul %4, %5, %cst {dimension_numbers = #tpu.dot_dimension_numbers<[1], [0], [0], [1], [0, 0, 1, 1], [], []>} : vector<16x256xbf16>, vector<256x128xbf16>, vector<16x128xf32> -> vector<16x128xf32>
    %7 = arith.addf %3, %6 : vector<16x128xf32>
    %c0_6 = arith.constant 0 : index
    %c0_7 = arith.constant 0 : index
    %8 = vector.load %arg4[%c0_6, %c0_7] : memref<16x128xf32, #tpu.memory_space<vmem>>, vector<16x128xf32>
    tpu.vector_store %arg4[%c0_6, %c0_7], %7 {strides = array<i32>} : memref<16x128xf32, #tpu.memory_space<vmem>>, vector<16x128xf32>,
    %c0_i32_8 = arith.constant 0 : i32
    %9 = arith.cmpi eq, %arg0, %c0_i32_8 : i32
    %10 = arith.extui %9 : i1 to i32
    %c0_i32_9 = arith.constant 0 : i32
    %11 = arith.cmpi ne, %10, %c0_i32_9 : i32
    scf.if %11 {
      %c0_10 = arith.constant 0 : index
      %c0_11 = arith.constant 0 : index
      %12 = vector.load %arg4[%c0_10, %c0_11] : memref<16x128xf32, #tpu.memory_space<vmem>>, vector<16x128xf32>
      %c0_12 = arith.constant 0 : index
      %c0_13 = arith.constant 0 : index
      %13 = vector.load %arg3[%c0_12, %c0_13] : memref<16x1xf32, #tpu.memory_space<vmem>>, vector<16x1xf32>
      %14 = vector.broadcast %13 : vector<16x1xf32> to vector<16x128xf32>
      %15 = arith.mulf %12, %14 : vector<16x128xf32>
      %c0_14 = arith.constant 0 : index
      %c0_15 = arith.constant 0 : index
      %16 = vector.load %arg4[%c0_14, %c0_15] : memref<16x128xf32, #tpu.memory_space<vmem>>, vector<16x128xf32>
      tpu.vector_store %arg4[%c0_14, %c0_15], %15 {strides = array<i32>} : memref<16x128xf32, #tpu.memory_space<vmem>>, vector<16x128xf32>,
    } else {
    }
    return
  }
  func.func @transform_0(%arg0: i32) -> (i32, i32) {
    %c0_i32 = arith.constant 0 : i32
    %c0_i32_0 = arith.constant 0 : i32
    return %c0_i32, %arg0 : i32, i32
  }
  func.func @transform_1(%arg0: i32) -> (i32, i32) {
    %c0_i32 = arith.constant 0 : i32
    %c0_i32_0 = arith.constant 0 : i32
    return %arg0, %c0_i32 : i32, i32
  }
  func.func @transform_2(%arg0: i32) -> (i32, i32) {
    %c0_i32 = arith.constant 0 : i32
    %c0_i32_0 = arith.constant 0 : i32
    %c0_i32_1 = arith.constant 0 : i32
    return %c0_i32, %c0_i32_0 : i32, i32
  }
  func.func @transform_3(%arg0: i32) -> (i32, i32) {
    %c0_i32 = arith.constant 0 : i32
    %c0_i32_0 = arith.constant 0 : i32
    %c0_i32_1 = arith.constant 0 : i32
    return %c0_i32, %c0_i32_0 : i32, i32
  }
}

</mosaic_0001>

<bundles_post_ra>
// kernel: gcn_encoder_forward.5
= control target key start
LH: loop header
LB: loop body
LE: loop exit
PB: predicated region body
PF: predicated region fallthrough
CT: control target
= control target key end

     0   :  { %v295_v1 = vmov 0   ;;  %s382_s1 = inlined_call_operand.vmem [shape: bf16[256,128], index: 1, kind: input, shape index: {}]   ;;  %s383_s0 = inlined_call_operand.vmem [shape: bf16[16,256], index: 0, kind: input, shape index: {}]   ;;  %s384_s2 = inlined_call_operand.vmem [shape: f32[16,1], index: 2, kind: input, shape index: {}]   ;;  %s385_s3 = inlined_call_operand.vmem [shape: f32[16,128], index: 3, kind: output, shape index: {}]  }
   0x1   :  { %v276_v0 = vld [vmem:[%s382_s1 + $0x40] sm:$0xff]   ;;  %275 = vset.pattern.permute.xlu0 %v295_v1  ;;  %v278_v3 = vld [vmem:[%s382_s1 + $0x48] sm:$0xff]   ;;  %v280_v5 = vld [vmem:[%s382_s1 + $0x50] sm:$0xff]  }
   0x2   :  { %v277_v2 = vld [vmem:[%s382_s1] sm:$0xff]   ;;  %251 = vmatprep.subr.bf16.mxu0 %v276_v0  ;;  %v279_v4 = vld [vmem:[%s382_s1 + $0x8] sm:$0xff]   ;;  %v281_v6 = vld [vmem:[%s382_s1 + $0x10] sm:$0xff]  }
   0x3   :  { %252 = vmatpush3.bf16.msra.mxu0 %v277_v2  ;;  %v282_v7 = vld [vmem:[%s382_s1 + $0x58] sm:$0xff]   ;;  %v284_v9 = vld [vmem:[%s382_s1 + $0x60] sm:$0xff]   ;;  %v286_v11 = vld [vmem:[%s382_s1 + $0x68] sm:$0xff]  }
   0x4   :  { %253 = vmatprep.subr.bf16.mxu0 %v278_v3  ;;  %v283_v8 = vld [vmem:[%s382_s1 + $0x18] sm:$0xff]   ;;  %v285_v10 = vld [vmem:[%s382_s1 + $0x20] sm:$0xff]   ;;  %v287_v14 = vld [vmem:[%s382_s1 + $0x28] sm:$0xff]  }
   0x5   :  { %v294_v12 = vld [vmem:[%s383_s0 + $0x4] ss:$8 sps:$4 sm:$0xff]   ;;  %v288_v16 = vld [vmem:[%s382_s1 + $0x70] sm:$0xff]   ;;  %v290_v18 = vld [vmem:[%s382_s1 + $0x78] sm:$0xff]  }
   0x6   :  { %v213_v13 = vld [vmem:[%s384_s2] sm:$0xff]  ;;  %195 = vmatprep.mubr.bf16.mxu0 %v294_v12  ;;  %v214_v15 = vld [vmem:[%s384_s2 + $0x8] sm:$0xff]  ;;  %v289_v17 = vld [vmem:[%s382_s1 + $0x30] sm:$0xff]  }
   0x7   :  { %254 = vmatpush3.bf16.msra.mxu0 %v279_v4  ;;  %217 = vperm.xlu0 %275, %v213_v13   ;;  %v291_v19 = vld [vmem:[%s382_s1 + $0x38] sm:$0xff]   ;;  %v292_v20 = vld [vmem:[%s383_s0] ss:$8 sps:$4 sm:$0xff]  }
   0x8   :  { %255 = vmatprep.subr.bf16.mxu0 %v280_v5 }
   0xb   :  { %256 = vmatpush3.bf16.msra.mxu0 %v281_v6  ;;  %222 = vperm.xlu0 %275, %v214_v15  }
   0xc   :  { %257 = vmatprep.subr.bf16.mxu0 %v282_v7 }
   0xf   :  { %258 = vmatpush3.bf16.msra.mxu0 %v283_v8 }
  0x10   :  { %259 = vmatprep.subr.bf16.mxu0 %v284_v9 }
  0x13   :  { %260 = vmatpush3.bf16.msra.mxu0 %v285_v10 }
  0x14   :  { %261 = vmatprep.subr.bf16.mxu0 %v286_v11 }
  0x17   :  { %262 = vmatpush3.bf16.msra.mxu0 %v287_v14 }
  0x18   :  { %263 = vmatprep.subr.bf16.mxu0 %v288_v16 }
  0x1b   :  { %264 = vmatpush3.bf16.msra.mxu0 %v289_v17 }
  0x1c   :  { %265 = vmatprep.subr.bf16.mxu0 %v290_v18 }
  0x1f   :  { %266 = vmatpush3.bf16.msra.mxu0 %v291_v19 }
  0x22   :  { %196 = vmatmul.mubr.bf16.vlgmr.msra.gmra.mrb[0].mxu0 %v292_v20 }
  0x86   :  { %v218_v23 = vpop.permute.xlu0 %217 }
  0x8a   :  { %v223_v29 = vpop.permute.xlu0 %222 }
  0xf5   :  { %v267_v21 = vpop.f32.mrb[0].mxu0 }
  0xf6   :  { %v268_v22 = vpop.f32.mrb[1].mxu0 }
  0xf7   :  { %v269_v24 = vadd.f32 %v268_v22, %v267_v21  ;;  %v270_v25 = vpop.f32.mrb[2].mxu0 }
  0xf8   :  { %v271_v26 = vpop.f32.mrb[3].mxu0 }
  0xf9   :  { %v272_v27 = vadd.f32 %v271_v26, %v270_v25  ;;  %v225_v28 = vmul.f32 %v269_v24, %v218_v23 }
  0xfb   :  { %227 = vst [vmem:[%s385_s3] sm:$0xff] %v225_v28  ;;  %v226_v30 = vmul.f32 %v272_v27, %v223_v29 }
  0xfd   :  { %228 = vst [vmem:[%s385_s3 + $0x8] sm:$0xff] %v226_v30 }

// kernel: gcn_encoder_forward.3
= control target key start
LH: loop header
LB: loop body
LE: loop exit
PB: predicated region body
PF: predicated region fallthrough
CT: control target
= control target key end

     0   :  { %s1776_s18 = smov 0   ;;  %s1778_s19 = smov 0   ;;  %s2059_s0 = inlined_call_operand.vmem [shape: s8[256,256], index: 0, kind: input, shape index: {}]   ;;  %s2060_s1 = inlined_call_operand.vmem [shape: bf16[256,128], index: 1, kind: input, shape index: {}]   ;;  %s2061_s2 = inlined_call_operand.vmem [shape: f32[256,1], index: 2, kind: input, shape index: {}]   ;;  %s2062_s3 = inlined_call_operand.vmem [shape: f32[128,128], index: 3, kind: input, shape index: {}]   ;;  %s2063_s4 = inlined_call_operand.vmem [shape: f32[1,128], index: 4, kind: input, shape index: {}]   ;;  %s2064_s5 = inlined_call_operand.vmem [shape: bf16[256,128], index: 5, kind: output, shape index: {}]  }
   0x1   :  { %s1780_s20 = smov 0  }
   0x2 LB: > { %s27_s21 = sadd.s32 1, %s1739_s19  ;;  %p1325_p0 = scmp.ge.s32.totalorder %s1743_s20, 1  ;;  %s1743_s20 = sphi %s1780_s20, %s15_s20   ;;  %s1739_s19 = sphi %s1778_s19, %s2066_s19   ;;  %s1735_s18 = sphi %s1776_s18, %s2065_s18  }
   0x3   : > { %p29_p1 = scmp.ge.s32.totalorder %s27_s21, 2  ;;  %p208_p2 = scmp.lt.s32.totalorder %s1743_s20, 3 }
   0x5   : > { %s2068_s21 = smov (%p29_p1, %s27_s21), 0  ;;  %p209_p3 = pnand %p1325_p0, %p208_p2 }
   0x6   : > { %v366_v0 = vld [vmem:[%s2061_s2 + $0x80] sm:$0xff] (!%p209_p3)  ;;  %v1745_v2 = vmov (!%p209_p3), 0   ;;  %v367_v3 = vld [vmem:[%s2061_s2 + $0x88] sm:$0xff] (!%p209_p3)  ;;  %v368_v5 = vld [vmem:[%s2061_s2 + $0x90] sm:$0xff] (!%p209_p3)  ;;  %s1326_s15 = sshll.u32 (!%p209_p3), %s1735_s18, 4  ;;  %s1347_s16 = sshll.u32 (!%p209_p3), %s1735_s18, 7 }
   0x7   : > { %212 = sbr.rel (%p209_p3) target bundleno = 698 (0x2ba), region = 40  ;;  %v350_v1 = vld [vmem:[%s2061_s2] sm:$0xff] (!%p209_p3)  ;;  %1720 = vset.pattern.permute.xlu1 (!%p209_p3), %v1745_v2  ;;  %1719 = vset.pattern.permute.xlu0 (!%p209_p3), %v1745_v2  ;;  %v351_v4 = vld [vmem:[%s2061_s2 + $0x8] sm:$0xff] (!%p209_p3)  ;;  %v369_v6 = vld [vmem:[%s2061_s2 + $0x98] sm:$0xff] (!%p209_p3)  ;;  %p243_p4 = scmp.lt.s32.totalorder (!%p209_p3), %s1326_s15, 31 }
   0x8   : > { %464 = vperm.xlu0 (!%p209_p3), %1719, %v366_v0   ;;  %384 = vperm.xlu1 (!%p209_p3), %1720, %v350_v1   ;;  %v352_v7 = vld [vmem:[%s2061_s2 + $0x10] sm:$0xff] (!%p209_p3)  ;;  %v353_v8 = vld [vmem:[%s2061_s2 + $0x18] sm:$0xff] (!%p209_p3)  ;;  %v370_v9 = vld [vmem:[%s2061_s2 + $0xa0] sm:$0xff] (!%p209_p3)  ;;  %s1899_s27 = scalar_lea.vmem (!%p209_p3), %s2061_s2, %s1347_s16 }
   0x9   : > { %v371_v10 = vld [vmem:[%s2061_s2 + $0xa8] sm:$0xff] (!%p209_p3)  ;;  %v354_v11 = vld [vmem:[%s2061_s2 + $0x20] sm:$0xff] (!%p209_p3)  ;;  %v372_v13 = vld [vmem:[%s2061_s2 + $0xb0] sm:$0xff] (!%p209_p3) }
   0xa   : > { %v355_v12 = vld [vmem:[%s2061_s2 + $0x28] sm:$0xff] (!%p209_p3)  ;;  %v373_v14 = vld [vmem:[%s2061_s2 + $0xb8] sm:$0xff] (!%p209_p3)  ;;  %v356_v15 = vld [vmem:[%s2061_s2 + $0x30] sm:$0xff] (!%p209_p3) }
   0xb   : > { %v357_v16 = vld [vmem:[%s2061_s2 + $0x38] sm:$0xff] (!%p209_p3)  ;;  %v374_v17 = vld [vmem:[%s2061_s2 + $0xc0] sm:$0xff] (!%p209_p3)  ;;  %v375_v18 = vld [vmem:[%s2061_s2 + $0xc8] sm:$0xff] (!%p209_p3) }
   0xc   : > { %469 = vperm.xlu0 (!%p209_p3), %1719, %v367_v3   ;;  %389 = vperm.xlu1 (!%p209_p3), %1720, %v351_v4   ;;  %v358_v19 = vld [vmem:[%s2061_s2 + $0x40] sm:$0xff] (!%p209_p3)  ;;  %v359_v20 = vld [vmem:[%s2061_s2 + $0x48] sm:$0xff] (!%p209_p3)  ;;  %v376_v21 = vld [vmem:[%s2061_s2 + $0xd0] sm:$0xff] (!%p209_p3) }
   0xd   : > { %v377_v22 = vld [vmem:[%s2061_s2 + $0xd8] sm:$0xff] (!%p209_p3)  ;;  %v360_v23 = vld [vmem:[%s2061_s2 + $0x50] sm:$0xff] (!%p209_p3)  ;;  %v378_v25 = vld [vmem:[%s2061_s2 + $0xe0] sm:$0xff] (!%p209_p3) }
   0xe   : > { %v361_v24 = vld [vmem:[%s2061_s2 + $0x58] sm:$0xff]  ;;  %v379_v26 = vld [vmem:[%s2061_s2 + $0xe8] sm:$0xff]  ;;  %v362_v27 = vld [vmem:[%s2061_s2 + $0x60] sm:$0xff]  ;;  %s2070_s15 = smov (!%p243_p4, %s1326_s15), 31 }
   0xf   : > { %v363_v28 = vld [vmem:[%s2061_s2 + $0x68] sm:$0xff]  ;;  %v380_v29 = vld [vmem:[%s2061_s2 + $0xf0] sm:$0xff]  ;;  %v381_v30 = vld [vmem:[%s2061_s2 + $0xf8] sm:$0xff]  ;;  %s1367_s18 = sshll.u32 %s2070_s15, 2 }
  0x10   : > { %474 = vperm.xlu0 %1719, %v368_v5   ;;  %479 = vperm.xlu1 %1720, %v369_v6   ;;  %v364_v31 = vld [vmem:[%s2061_s2 + $0x70] sm:$0xff]  ;;  %v365_v32 = vld [vmem:[%s2061_s2 + $0x78] sm:$0xff]  ;;  %s1907_s30 = scalar_lea.vmem %s2059_s0, %s1367_s18  ;;  %v852_v33 = vld [vmem:[%s1899_s27] sm:$0xff]  ;;  %s2040_s17 = scalar_lea.vmem %s2064_s5, %s1367_s18 }
  0x11   : > { %v853_v34 = vld [vmem:[%s1899_s27 + $0x8] sm:$0xff]  ;;  %v590_v35 = vld [vmem:[%s1907_s30] sm:$0xff]   ;;  %v854_v39 = vld [vmem:[%s1899_s27 + $0x10] sm:$0xff] }
  0x12   : > { %v606_v36 = vunpack.c.l.s8.bf16 %v590_v35  ;;  %v607_v37 = vunpack.c.h.s8.bf16 %v590_v35  ;;  %v855_v40 = vld [vmem:[%s1899_s27 + $0x18] sm:$0xff]  ;;  %v856_v42 = vld [vmem:[%s1899_s27 + $0x20] sm:$0xff]  ;;  %v857_v43 = vld [vmem:[%s1899_s27 + $0x28] sm:$0xff] }
  0x13   : > { %v858_v44 = vld [vmem:[%s1899_s27 + $0x30] sm:$0xff]  ;;  %v859_v45 = vld [vmem:[%s1899_s27 + $0x38] sm:$0xff]  ;;  %v860_v46 = vld [vmem:[%s1899_s27 + $0x40] sm:$0xff] }
  0x14   : > { %394 = vperm.xlu0 %1719, %v352_v7   ;;  %399 = vperm.xlu1 %1720, %v353_v8   ;;  %v1332_v38 = vcombine.high %v606_v36, %v607_v37  ;;  %v1914_v41 = vcombine.low %v606_v36, %v607_v37  ;;  %v861_v47 = vld [vmem:[%s1899_s27 + $0x48] sm:$0xff]  ;;  %v862_v48 = vld [vmem:[%s1899_s27 + $0x50] sm:$0xff]  ;;  %v863_v49 = vld [vmem:[%s1899_s27 + $0x58] sm:$0xff] }
  0x15   : > { %v864_v50 = vld [vmem:[%s1899_s27 + $0x60] sm:$0xff]  ;;  %v865_v51 = vld [vmem:[%s1899_s27 + $0x68] sm:$0xff]  ;;  %v866_v52 = vld [vmem:[%s1899_s27 + $0x70] sm:$0xff] }
  0x16   : > { %750 = vmatprep.mubr.bf16.mxu0 %v1332_v38  ;;  %v867_v53 = vld [vmem:[%s1899_s27 + $0x78] sm:$0xff]  ;;  %v980_v54 = vld [vmem:[%s2062_s3] sm:$0xff]  ;;  %v981_v55 = vld [vmem:[%s2062_s3 + $0x8] sm:$0xff] }
  0x17   : > { %v982_v56 = vld [vmem:[%s2062_s3 + $0x10] sm:$0xff]  ;;  %v1495_v57 = vld [vmem:[%s2060_s1 + $0x40] sm:$0xff]   ;;  %v1662_v58 = vpack.c.bf16 %v981_v55, %v980_v54  ;;  %v983_v59 = vld [vmem:[%s2062_s3 + $0x18] sm:$0xff] }
  0x18   : > { %484 = vperm.xlu0 %1719, %v370_v9   ;;  %489 = vperm.xlu1 %1720, %v371_v10   ;;  %v1385_v60 = vld [vmem:[%s2060_s1] sm:$0xff]   ;;  %v1666_v61 = vpack.c.bf16 %v983_v59, %v982_v56  ;;  %v985_v63 = vld [vmem:[%s2062_s3 + $0x28] sm:$0xff]  ;;  %v1418_v1 = vunpack.c.l.bf16 %v1495_v57  ;;  %v1419_v4 = vunpack.c.h.bf16 %v1495_v57  ;;  %v986_v8 = vld [vmem:[%s2062_s3 + $0x30] sm:$0xff] }
  0x19   : > { %v984_v62 = vld [vmem:[%s2062_s3 + $0x20] sm:$0xff]  ;;  %1663 = vmatprep.subr.bf16.mxu1 %v1662_v58  ;;  %v1386_v3 = vunpack.c.l.bf16 %v1385_v60  ;;  %v1387_v5 = vunpack.c.h.bf16 %v1385_v60  ;;  %v1496_v6 = vld [vmem:[%s2060_s1 + $0x48] sm:$0xff]   ;;  %v987_v9 = vld [vmem:[%s2062_s3 + $0x38] sm:$0xff] }
  0x1a   : > { %1665 = vmatpush3.bf16.msra.mxu1 %v1662_v58  ;;  %v1670_v7 = vpack.c.bf16 %v985_v63, %v984_v62  ;;  %v1490_v59 = vld [vmem:[%s2060_s1 + $0x18] sm:$0xff]  }
  0x1b   : > { %1667 = vmatprep.subr.bf16.mxu1 %v1666_v61 }
  0x1c   : > { %404 = vperm.xlu0 %1719, %v354_v11   ;;  %409 = vperm.xlu1 %1720, %v355_v12   ;;  %v1422_v12 = vunpack.c.l.bf16 %v1496_v6 }
  0x1e   : > { %1669 = vmatpush3.bf16.msra.mxu1 %v1666_v61 }
  0x1f   : > { %1671 = vmatprep.subr.bf16.mxu1 %v1670_v7 }
  0x20   : > { %494 = vperm.xlu0 %1719, %v372_v13   ;;  %499 = vperm.xlu1 %1720, %v373_v14   ;;  %v1423_v13 = vunpack.c.h.bf16 %v1496_v6  ;;  %v1674_v14 = vpack.c.bf16 %v987_v9, %v986_v8 }
  0x22   : > { %1673 = vmatpush3.bf16.msra.mxu1 %v1670_v7 }
  0x23   : > { %1675 = vmatprep.subr.bf16.mxu1 %v1674_v14 }
  0x24   : > { %414 = vperm.xlu0 %1719, %v356_v15   ;;  %419 = vperm.xlu1 %1720, %v357_v16  }
  0x26   : > { %1677 = vmatpush3.bf16.msra.mxu1 %v1674_v14 }
  0x28   : > { %504 = vperm.xlu0 %1719, %v374_v17   ;;  %509 = vperm.xlu1 %1720, %v375_v18  }
  0x2c   : > { %424 = vperm.xlu0 %1719, %v358_v19   ;;  %429 = vperm.xlu1 %1720, %v359_v20   ;;  %v1488_v19 = vld [vmem:[%s2060_s1 + $0x8] sm:$0xff]   ;;  %v988_v20 = vld [vmem:[%s2062_s3 + $0x40] sm:$0xff] }
  0x30   : > { %514 = vperm.xlu0 %1719, %v376_v21   ;;  %519 = vperm.xlu1 %1720, %v377_v22   ;;  %v989_v21 = vld [vmem:[%s2062_s3 + $0x48] sm:$0xff] }
  0x34   : > { %434 = vperm.xlu0 %1719, %v360_v23   ;;  %439 = vperm.xlu1 %1720, %v361_v24  }
  0x38   : > { %524 = vperm.xlu0 %1719, %v378_v25   ;;  %529 = vperm.xlu1 %1720, %v379_v26   ;;  %v1390_v26 = vunpack.c.l.bf16 %v1488_v19 }
  0x3c   : > { %444 = vperm.xlu0 %1719, %v362_v27   ;;  %449 = vperm.xlu1 %1720, %v363_v28  }
  0x40   : > { %534 = vperm.xlu0 %1719, %v380_v29   ;;  %539 = vperm.xlu1 %1720, %v381_v30   ;;  %v1391_v29 = vunpack.c.h.bf16 %v1488_v19  ;;  %v1497_v30 = vld [vmem:[%s2060_s1 + $0x50] sm:$0xff]   ;;  %v1500_v19 = vld [vmem:[%s2060_s1 + $0x68] sm:$0xff]  }
  0x41   : > { %v1426_v37 = vunpack.c.l.bf16 %v1497_v30 }
  0x44   : > { %454 = vperm.xlu0 %1719, %v364_v31   ;;  %459 = vperm.xlu1 %1720, %v365_v32   ;;  %v1678_v31 = vpack.c.bf16 %v989_v21, %v988_v20  ;;  %v990_v32 = vld [vmem:[%s2062_s3 + $0x50] sm:$0xff] }
  0x46   : > { %1679 = vmatprep.subr.bf16.mxu1 %v1678_v31 }
  0x47   : > { %1681 = vmatpush3.bf16.msra.mxu1 %v1678_v31 }
  0x48   : > { %886 = vperm.xlu0 %1719, %v852_v33   ;;  %891 = vperm.xlu1 %1720, %v853_v34   ;;  %v991_v33 = vld [vmem:[%s2062_s3 + $0x58] sm:$0xff] }
  0x4c   : > { %896 = vperm.xlu0 %1719, %v854_v39   ;;  %901 = vperm.xlu1 %1720, %v855_v40   ;;  %v1427_v40 = vunpack.c.h.bf16 %v1497_v30 }
  0x50   : > { %906 = vperm.xlu0 %1719, %v856_v42   ;;  %911 = vperm.xlu1 %1720, %v857_v43   ;;  %v1682_v42 = vpack.c.bf16 %v991_v33, %v990_v32  ;;  %v1489_v43 = vld [vmem:[%s2060_s1 + $0x10] sm:$0xff]  }
  0x52   : > { %1683 = vmatprep.subr.bf16.mxu1 %v1682_v42 }
  0x53   : > { %1685 = vmatpush3.bf16.msra.mxu1 %v1682_v42 }
  0x54   : > { %916 = vperm.xlu0 %1719, %v858_v44   ;;  %921 = vperm.xlu1 %1720, %v859_v45  }
  0x58   : > { %926 = vperm.xlu0 %1719, %v860_v46   ;;  %931 = vperm.xlu1 %1720, %v861_v47  }
  0x5c   : > { %936 = vperm.xlu0 %1719, %v862_v48   ;;  %941 = vperm.xlu1 %1720, %v863_v49   ;;  %v1394_v49 = vunpack.c.l.bf16 %v1489_v43 }
  0x60   : > { %946 = vperm.xlu0 %1719, %v864_v50   ;;  %951 = vperm.xlu1 %1720, %v865_v51   ;;  %v1395_v50 = vunpack.c.h.bf16 %v1489_v43  ;;  %v1498_v51 = vld [vmem:[%s2060_s1 + $0x58] sm:$0xff]  }
  0x61   : > { %v1430_v57 = vunpack.c.l.bf16 %v1498_v51  ;;  %v1431_v58 = vunpack.c.h.bf16 %v1498_v51 }
  0x64   : > { %956 = vperm.xlu0 %1719, %v866_v52   ;;  %961 = vperm.xlu1 %1720, %v867_v53  }
  0x87   : > { %v465_v0 = vpop.permute.xlu0 %464  ;;  %v385_v2 = vpop.permute.xlu1 %384 }
  0x88   : > { %v558_v15 = vmul.f32 %v1418_v1, %v465_v0  ;;  %v542_v16 = vmul.f32 %v1386_v3, %v385_v2  ;;  %v1398_v1 = vunpack.c.l.bf16 %v1490_v59  ;;  %v1399_v2 = vunpack.c.h.bf16 %v1490_v59  ;;  %v1499_v3 = vld [vmem:[%s2060_s1 + $0x60] sm:$0xff]  }
  0x89   : > { %v1434_v9 = vunpack.c.l.bf16 %v1499_v3 }
  0x8b   : > { %v470_v10 = vpop.permute.xlu0 %469  ;;  %v390_v11 = vpop.permute.xlu1 %389 }
  0x8c   : > { %v559_v17 = vmul.f32 %v1419_v4, %v470_v10  ;;  %v543_v18 = vmul.f32 %v1387_v5, %v390_v11  ;;  %v1435_v10 = vunpack.c.h.bf16 %v1499_v3  ;;  %v1491_v11 = vld [vmem:[%s2060_s1 + $0x20] sm:$0xff]  }
  0x8e   : > { %v582_v22 = vpack.c.bf16 %v559_v17, %v558_v15  ;;  %v574_v23 = vpack.c.bf16 %v543_v18, %v542_v16  ;;  %v1402_v17 = vunpack.c.l.bf16 %v1491_v11  ;;  %v1403_v18 = vunpack.c.h.bf16 %v1491_v11 }
  0x8f   : > { %v475_v24 = vpop.permute.xlu0 %474  ;;  %v480_v25 = vpop.permute.xlu1 %479 }
  0x90   : > { %v560_v27 = vmul.f32 %v1422_v12, %v475_v24  ;;  %v561_v28 = vmul.f32 %v1423_v13, %v480_v25  ;;  %1510 = vmatprep.subr.bf16.mxu0 %v582_v22  ;;  %v1438_v25 = vunpack.c.l.bf16 %v1500_v19 }
  0x91   : > { %1511 = vmatpush3.bf16.msra.mxu0 %v574_v23 }
  0x92   : > { %v583_v34 = vpack.c.bf16 %v561_v28, %v560_v27  ;;  %v1492_v27 = vld [vmem:[%s2060_s1 + $0x28] sm:$0xff]  }
  0x93   : > { %v395_v35 = vpop.permute.xlu0 %394  ;;  %v400_v36 = vpop.permute.xlu1 %399  ;;  %v1406_v33 = vunpack.c.l.bf16 %v1492_v27 }
  0x94   : > { %v544_v38 = vmul.f32 %v1390_v26, %v395_v35  ;;  %v545_v39 = vmul.f32 %v1391_v29, %v400_v36  ;;  %1512 = vmatprep.subr.bf16.mxu0 %v583_v34  ;;  %v1439_v26 = vunpack.c.h.bf16 %v1500_v19  ;;  %v1407_v34 = vunpack.c.h.bf16 %v1492_v27  ;;  %v1501_v35 = vld [vmem:[%s2060_s1 + $0x70] sm:$0xff]   ;;  %v596_v19 = vld [vmem:[%s1907_s30 + $0x18] sm:$0xff]  }
  0x95   : > { %v1442_v42 = vunpack.c.l.bf16 %v1501_v35  ;;  %v1443_v43 = vunpack.c.h.bf16 %v1501_v35 }
  0x96   : > { %v575_v44 = vpack.c.bf16 %v545_v39, %v544_v38 }
  0x97   : > { %v485_v45 = vpop.permute.xlu0 %484  ;;  %v490_v46 = vpop.permute.xlu1 %489 }
  0x98   : > { %v562_v47 = vmul.f32 %v1426_v37, %v485_v45  ;;  %v563_v48 = vmul.f32 %v1427_v40, %v490_v46  ;;  %1513 = vmatpush3.bf16.msra.mxu0 %v575_v44  ;;  %v1493_v44 = vld [vmem:[%s2060_s1 + $0x30] sm:$0xff]  }
  0x99   : > { %v1411_v51 = vunpack.c.h.bf16 %v1493_v44 }
  0x9a   : > { %v584_v52 = vpack.c.bf16 %v563_v48, %v562_v47 }
  0x9b   : > { %v405_v53 = vpop.permute.xlu0 %404  ;;  %v410_v54 = vpop.permute.xlu1 %409 }
  0x9c   : > { %v546_v55 = vmul.f32 %v1394_v49, %v405_v53  ;;  %v547_v56 = vmul.f32 %v1395_v50, %v410_v54  ;;  %1514 = vmatprep.subr.bf16.mxu0 %v584_v52  ;;  %v1410_v50 = vunpack.c.l.bf16 %v1493_v44  ;;  %v1502_v52 = vld [vmem:[%s2060_s1 + $0x78] sm:$0xff]  }
  0x9d   : > { %v1447_v59 = vunpack.c.h.bf16 %v1502_v52 }
  0x9e   : > { %v576_v60 = vpack.c.bf16 %v547_v56, %v546_v55 }
  0x9f   : > { %v495_v61 = vpop.permute.xlu0 %494  ;;  %v500_v62 = vpop.permute.xlu1 %499 }
  0xa0   : > { %v564_v63 = vmul.f32 %v1430_v57, %v495_v61  ;;  %v565_v0 = vmul.f32 %v1431_v58, %v500_v62  ;;  %1515 = vmatpush3.bf16.msra.mxu0 %v576_v60  ;;  %v1446_v58 = vunpack.c.l.bf16 %v1502_v52  ;;  %v1494_v60 = vld [vmem:[%s2060_s1 + $0x38] sm:$0xff]  }
  0xa1   : > { %v1415_v3 = vunpack.c.h.bf16 %v1494_v60 }
  0xa2   : > { %v585_v4 = vpack.c.bf16 %v565_v0, %v564_v63 }
  0xa3   : > { %v415_v5 = vpop.permute.xlu0 %414  ;;  %v420_v6 = vpop.permute.xlu1 %419 }
  0xa4   : > { %v548_v7 = vmul.f32 %v1398_v1, %v415_v5  ;;  %v549_v8 = vmul.f32 %v1399_v2, %v420_v6  ;;  %1516 = vmatprep.subr.bf16.mxu0 %v585_v4  ;;  %v1414_v2 = vunpack.c.l.bf16 %v1494_v60  ;;  %v592_v4 = vld [vmem:[%s1907_s30 + $0x8] sm:$0xff]  }
  0xa5   : > { %v609_v11 = vunpack.c.h.s8.bf16 %v592_v4 }
  0xa6   : > { %v577_v12 = vpack.c.bf16 %v549_v8, %v548_v7 }
  0xa7   : > { %v505_v13 = vpop.permute.xlu0 %504  ;;  %v510_v14 = vpop.permute.xlu1 %509 }
  0xa8   : > { %v566_v15 = vmul.f32 %v1434_v9, %v505_v13  ;;  %v567_v16 = vmul.f32 %v1435_v10, %v510_v14  ;;  %1517 = vmatpush3.bf16.msra.mxu0 %v577_v12  ;;  %v608_v10 = vunpack.c.l.s8.bf16 %v592_v4  ;;  %v594_v14 = vld [vmem:[%s1907_s30 + $0x10] sm:$0xff]  }
  0xaa   : > { %v586_v20 = vpack.c.bf16 %v567_v16, %v566_v15  ;;  %v1334_v13 = vcombine.high %v608_v10, %v609_v11  ;;  %v610_v15 = vunpack.c.l.s8.bf16 %v594_v14  ;;  %v611_v16 = vunpack.c.h.s8.bf16 %v594_v14 }
  0xab   : > { %v425_v21 = vpop.permute.xlu0 %424  ;;  %v430_v22 = vpop.permute.xlu1 %429 }
  0xac   : > { %v550_v23 = vmul.f32 %v1402_v17, %v425_v21  ;;  %v551_v24 = vmul.f32 %v1403_v18, %v430_v22  ;;  %1518 = vmatprep.subr.bf16.mxu0 %v586_v20  ;;  %v1333_v17 = vcombine.low %v608_v10, %v609_v11  ;;  %v1336_v18 = vcombine.high %v610_v15, %v611_v16 }
  0xad   : > { %v612_v20 = vunpack.c.l.s8.bf16 %v596_v19  ;;  %v613_v21 = vunpack.c.h.s8.bf16 %v596_v19  ;;  %v1335_v22 = vcombine.low %v610_v15, %v611_v16 }
  0xae   : > { %v578_v28 = vpack.c.bf16 %v551_v24, %v550_v23  ;;  %v598_v24 = vld [vmem:[%s1907_s30 + $0x20] sm:$0xff]  }
  0xaf   : > { %v515_v29 = vpop.permute.xlu0 %514  ;;  %v520_v30 = vpop.permute.xlu1 %519  ;;  %v1338_v23 = vcombine.high %v612_v20, %v613_v21 }
  0xb0   : > { %v568_v31 = vmul.f32 %v1438_v25, %v515_v29  ;;  %v569_v32 = vmul.f32 %v1439_v26, %v520_v30  ;;  %1519 = vmatpush3.bf16.msra.mxu0 %v578_v28  ;;  %v614_v25 = vunpack.c.l.s8.bf16 %v598_v24  ;;  %v615_v26 = vunpack.c.h.s8.bf16 %v598_v24  ;;  %v600_v28 = vld [vmem:[%s1907_s30 + $0x28] sm:$0xff]  }
  0xb1   : > { %v616_v29 = vunpack.c.l.s8.bf16 %v600_v28  ;;  %v617_v30 = vunpack.c.h.s8.bf16 %v600_v28 }
  0xb2   : > { %v587_v36 = vpack.c.bf16 %v569_v32, %v568_v31  ;;  %v1340_v27 = vcombine.high %v614_v25, %v615_v26  ;;  %v1339_v31 = vcombine.low %v614_v25, %v615_v26 }
  0xb3   : > { %v435_v37 = vpop.permute.xlu0 %434  ;;  %v440_v38 = vpop.permute.xlu1 %439  ;;  %v1342_v32 = vcombine.high %v616_v29, %v617_v30 }
  0xb4   : > { %v552_v39 = vmul.f32 %v1406_v33, %v435_v37  ;;  %v553_v40 = vmul.f32 %v1407_v34, %v440_v38  ;;  %1520 = vmatprep.subr.bf16.mxu0 %v587_v36  ;;  %v602_v33 = vld [vmem:[%s1907_s30 + $0x30] sm:$0xff]   ;;  %v1341_v36 = vcombine.low %v616_v29, %v617_v30  ;;  %v604_v38 = vld [vmem:[%s1907_s30 + $0x38] sm:$0xff]  }
  0xb5   : > { %v618_v34 = vunpack.c.l.s8.bf16 %v602_v33  ;;  %v619_v35 = vunpack.c.h.s8.bf16 %v602_v33 }
  0xb6   : > { %v579_v45 = vpack.c.bf16 %v553_v40, %v552_v39  ;;  %v620_v39 = vunpack.c.l.s8.bf16 %v604_v38  ;;  %v621_v40 = vunpack.c.h.s8.bf16 %v604_v38 }
  0xb7   : > { %v525_v46 = vpop.permute.xlu0 %524  ;;  %v530_v47 = vpop.permute.xlu1 %529  ;;  %v1344_v37 = vcombine.high %v618_v34, %v619_v35 }
  0xb8   : > { %v570_v48 = vmul.f32 %v1442_v42, %v525_v46  ;;  %v571_v49 = vmul.f32 %v1443_v43, %v530_v47  ;;  %1521 = vmatpush3.bf16.msra.mxu0 %v579_v45  ;;  %v1343_v42 = vcombine.low %v618_v34, %v619_v35  ;;  %v1346_v43 = vcombine.high %v620_v39, %v621_v40  ;;  %v992_v45 = vld [vmem:[%s2062_s3 + $0x60] sm:$0xff]  ;;  %v993_v46 = vld [vmem:[%s2062_s3 + $0x68] sm:$0xff] }
  0xb9   : > { %v1345_v44 = vcombine.low %v620_v39, %v621_v40  ;;  %v1686_v47 = vpack.c.bf16 %v993_v46, %v992_v45 }
  0xba   : > { %v588_v53 = vpack.c.bf16 %v571_v49, %v570_v48  ;;  %v994_v48 = vld [vmem:[%s2062_s3 + $0x70] sm:$0xff]  ;;  %v995_v49 = vld [vmem:[%s2062_s3 + $0x78] sm:$0xff] }
  0xbb   : > { %v445_v54 = vpop.permute.xlu0 %444  ;;  %v450_v55 = vpop.permute.xlu1 %449  ;;  %1687 = vmatprep.subr.bf16.mxu1 %v1686_v47 }
  0xbc   : > { %v554_v56 = vmul.f32 %v1410_v50, %v445_v54  ;;  %v555_v57 = vmul.f32 %v1411_v51, %v450_v55  ;;  %1522 = vmatprep.subr.bf16.mxu0 %v588_v53  ;;  %1689 = vmatpush3.bf16.msra.mxu1 %v1686_v47  ;;  %v1690_v50 = vpack.c.bf16 %v995_v49, %v994_v48 }
  0xbe   : > { %v580_v61 = vpack.c.bf16 %v555_v57, %v554_v56  ;;  %1691 = vmatprep.subr.bf16.mxu1 %v1690_v50 }
  0xbf   : > { %v535_v62 = vpop.permute.xlu0 %534  ;;  %v540_v63 = vpop.permute.xlu1 %539 }
  0xc0   : > { %v572_v0 = vmul.f32 %v1446_v58, %v535_v62  ;;  %v573_v1 = vmul.f32 %v1447_v59, %v540_v63  ;;  %1523 = vmatpush3.bf16.msra.mxu0 %v580_v61  ;;  %1693 = vmatpush3.bf16.msra.mxu1 %v1690_v50 }
  0xc2   : > { %v589_v5 = vpack.c.bf16 %v573_v1, %v572_v0 }
  0xc3   : > { %v455_v6 = vpop.permute.xlu0 %454  ;;  %v460_v7 = vpop.permute.xlu1 %459 }
  0xc4   : > { %v556_v8 = vmul.f32 %v1414_v2, %v455_v6  ;;  %v557_v9 = vmul.f32 %v1415_v3, %v460_v7  ;;  %1524 = vmatprep.subr.bf16.mxu0 %v589_v5 }
  0xc6   : > { %v581_v12 = vpack.c.bf16 %v557_v9, %v556_v8 }
  0xc7   : > { %v887_v55 = vpop.permute.xlu0 %886  ;;  %v892_v59 = vpop.permute.xlu1 %891 }
  0xc8   : > { %1525 = vmatpush3.bf16.msra.mxu0 %v581_v12 }
  0xcb   : > { %751 = vmatmul.mubr.bf16.vlgmr.msra.gmra.mrb[0].mxu0 %v1914_v41  ;;  %v1337_v41 = vcombine.low %v612_v20, %v613_v21  ;;  %v897_v1 = vpop.permute.xlu0 %896  ;;  %v902_v5 = vpop.permute.xlu1 %901 }
  0xcc   : > { %758 = vmatprep.mubr.bf16.mxu0 %v1334_v13 }
  0xcf   : > { %v907_v11 = vpop.permute.xlu0 %906  ;;  %v912_v15 = vpop.permute.xlu1 %911 }
  0xd3   : > { %759 = vmatmul.mubr.bf16.gmra.mrb[4].mxu0 %v1333_v17  ;;  %v917_v21 = vpop.permute.xlu0 %916  ;;  %v922_v25 = vpop.permute.xlu1 %921 }
  0xd4   : > { %766 = vmatprep.mubr.bf16.mxu0 %v1336_v18 }
  0xd7   : > { %v927_v30 = vpop.permute.xlu0 %926  ;;  %v932_v34 = vpop.permute.xlu1 %931 }
  0xdb   : > { %767 = vmatmul.mubr.bf16.gmra.mrb[8].mxu0 %v1335_v22  ;;  %v937_v40 = vpop.permute.xlu0 %936  ;;  %v942_v45 = vpop.permute.xlu1 %941 }
  0xdc   : > { %774 = vmatprep.mubr.bf16.mxu0 %v1338_v23 }
  0xe3   : > { %775 = vmatmul.mubr.bf16.gmra.mrb[12].mxu0 %v1337_v41 }
  0xe4   : > { %782 = vmatprep.mubr.bf16.mxu0 %v1340_v27 }
  0xeb   : > { %783 = vmatmul.mubr.bf16.gmra.mrb[16].mxu0 %v1339_v31 }
  0xec   : > { %790 = vmatprep.mubr.bf16.mxu0 %v1342_v32 }
  0xf3   : > { %791 = vmatmul.mubr.bf16.gmra.mrb[20].mxu0 %v1341_v36 }
  0xf4   : > { %798 = vmatprep.mubr.bf16.mxu0 %v1344_v37 }
  0xfb   : > { %799 = vmatmul.mubr.bf16.gmra.mrb[24].mxu0 %v1343_v42 }
  0xfc   : > { %806 = vmatprep.mubr.bf16.mxu0 %v1346_v43 }
 0x103   : > { %807 = vmatmul.mubr.bf16.gmra.mrb[28].mxu0 %v1345_v44 }
 0x19e   : > { %v1526_v51 = vpop.f32.mrb[0].mxu0 }
 0x19f   : > { %v1527_v52 = vpop.f32.mrb[1].mxu0 }
 0x1a0   : > { %v1528_v53 = vadd.f32 %v1527_v52, %v1526_v51  ;;  %v1529_v54 = vpop.f32.mrb[2].mxu0  ;;  %v947_v51 = vpop.permute.xlu0 %946 }
 0x1a1   : > { %v1530_v56 = vpop.f32.mrb[3].mxu0 }
 0x1a2   : > { %v1531_v57 = vadd.f32 %v1530_v56, %v1529_v54  ;;  %v964_v58 = vmul.f32 %v1528_v53, %v887_v55  ;;  %v952_v55 = vpop.permute.xlu1 %951 }
 0x1a4   : > { %v965_v60 = vmul.f32 %v1531_v57, %v892_v59  ;;  %1638 = vmatprep.mubr.f32.mxu1 %v964_v58 }
 0x1a6   : > { %v1532_v61 = vpop.f32.mrb[4].mxu0  ;;  %1639 = vmatmul.mubr.f32.vlgmr.msra.gmra.mrb[0].mxu1 %v965_v60 }
 0x1a7   : > { %v1533_v62 = vpop.f32.mrb[5].mxu0 }
 0x1a8   : > { %v1534_v63 = vadd.f32 %v1533_v62, %v1532_v61  ;;  %v1535_v0 = vpop.f32.mrb[6].mxu0  ;;  %v957_v61 = vpop.permute.xlu0 %956 }
 0x1a9   : > { %v1536_v2 = vpop.f32.mrb[7].mxu0 }
 0x1aa   : > { %v966_v3 = vmul.f32 %v1534_v63, %v897_v1  ;;  %v1537_v4 = vadd.f32 %v1536_v2, %v1535_v0  ;;  %v962_v1 = vpop.permute.xlu1 %961 }
 0x1ac   : > { %v967_v6 = vmul.f32 %v1537_v4, %v902_v5  ;;  %1641 = vmatprep.mubr.f32.mxu1 %v966_v3  ;;  %v1348_v3 = vld [vmem:[%s2063_s4] ss:$0 sm:$0xff] }
 0x1ae   : > { %v1538_v7 = vpop.f32.mrb[8].mxu0  ;;  %1642 = vmatmul.mubr.f32.gmra.mrb[2].mxu1 %v967_v6 }
 0x1af   : > { %v1539_v8 = vpop.f32.mrb[9].mxu0 }
 0x1b0   : > { %v1540_v9 = vadd.f32 %v1539_v8, %v1538_v7  ;;  %v1541_v10 = vpop.f32.mrb[10].mxu0 }
 0x1b1   : > { %v1542_v12 = vpop.f32.mrb[11].mxu0 }
 0x1b2   : > { %v968_v13 = vmul.f32 %v1540_v9, %v907_v11  ;;  %v1543_v14 = vadd.f32 %v1542_v12, %v1541_v10 }
 0x1b4   : > { %v969_v16 = vmul.f32 %v1543_v14, %v912_v15  ;;  %1644 = vmatprep.mubr.f32.mxu1 %v968_v13 }
 0x1b6   : > { %v1544_v17 = vpop.f32.mrb[12].mxu0  ;;  %1645 = vmatmul.mubr.f32.gmra.mrb[4].mxu1 %v969_v16 }
 0x1b7   : > { %v1545_v18 = vpop.f32.mrb[13].mxu0 }
 0x1b8   : > { %v1546_v19 = vadd.f32 %v1545_v18, %v1544_v17  ;;  %v1547_v20 = vpop.f32.mrb[14].mxu0 }
 0x1b9   : > { %v1548_v22 = vpop.f32.mrb[15].mxu0 }
 0x1ba   : > { %v970_v23 = vmul.f32 %v1546_v19, %v917_v21  ;;  %v1549_v24 = vadd.f32 %v1548_v22, %v1547_v20 }
 0x1bc   : > { %v971_v26 = vmul.f32 %v1549_v24, %v922_v25  ;;  %1647 = vmatprep.mubr.f32.mxu1 %v970_v23 }
 0x1be   : > { %v1550_v41 = vpop.f32.mrb[16].mxu0  ;;  %1648 = vmatmul.mubr.f32.gmra.mrb[6].mxu1 %v971_v26 }
 0x1bf   : > { %v1551_v27 = vpop.f32.mrb[17].mxu0 }
 0x1c0   : > { %v1552_v28 = vadd.f32 %v1551_v27, %v1550_v41  ;;  %v1553_v29 = vpop.f32.mrb[18].mxu0 }
 0x1c1   : > { %v1554_v31 = vpop.f32.mrb[19].mxu0 }
 0x1c2   : > { %v972_v32 = vmul.f32 %v1552_v28, %v927_v30  ;;  %v1555_v33 = vadd.f32 %v1554_v31, %v1553_v29 }
 0x1c4   : > { %v973_v35 = vmul.f32 %v1555_v33, %v932_v34  ;;  %1650 = vmatprep.mubr.f32.mxu1 %v972_v32 }
 0x1c6   : > { %v1556_v36 = vpop.f32.mrb[20].mxu0  ;;  %1651 = vmatmul.mubr.f32.gmra.mrb[8].mxu1 %v973_v35 }
 0x1c7   : > { %v1557_v37 = vpop.f32.mrb[21].mxu0 }
 0x1c8   : > { %v1558_v38 = vadd.f32 %v1557_v37, %v1556_v36  ;;  %v1559_v39 = vpop.f32.mrb[22].mxu0 }
 0x1c9   : > { %v1560_v42 = vpop.f32.mrb[23].mxu0 }
 0x1ca   : > { %v974_v43 = vmul.f32 %v1558_v38, %v937_v40  ;;  %v1561_v44 = vadd.f32 %v1560_v42, %v1559_v39 }
 0x1cc   : > { %v975_v46 = vmul.f32 %v1561_v44, %v942_v45  ;;  %1653 = vmatprep.mubr.f32.mxu1 %v974_v43 }
 0x1ce   : > { %v1562_v47 = vpop.f32.mrb[24].mxu0  ;;  %1654 = vmatmul.mubr.f32.gmra.mrb[10].mxu1 %v975_v46 }
 0x1cf   : > { %v1563_v48 = vpop.f32.mrb[25].mxu0 }
 0x1d0   : > { %v1564_v49 = vadd.f32 %v1563_v48, %v1562_v47  ;;  %v1565_v50 = vpop.f32.mrb[26].mxu0 }
 0x1d1   : > { %v1566_v52 = vpop.f32.mrb[27].mxu0 }
 0x1d2   : > { %v976_v53 = vmul.f32 %v1564_v49, %v947_v51  ;;  %v1567_v54 = vadd.f32 %v1566_v52, %v1565_v50 }
 0x1d4   : > { %v977_v56 = vmul.f32 %v1567_v54, %v952_v55  ;;  %1656 = vmatprep.mubr.f32.mxu1 %v976_v53 }
 0x1d6   : > { %v1568_v57 = vpop.f32.mrb[28].mxu0  ;;  %1657 = vmatmul.mubr.f32.gmra.mrb[12].mxu1 %v977_v56 }
 0x1d7   : > { %v1569_v58 = vpop.f32.mrb[29].mxu0 }
 0x1d8   : > { %v1570_v59 = vadd.f32 %v1569_v58, %v1568_v57  ;;  %v1571_v60 = vpop.f32.mrb[30].mxu0 }
 0x1d9   : > { %v1572_v62 = vpop.f32.mrb[31].mxu0 }
 0x1da   : > { %v978_v63 = vmul.f32 %v1570_v59, %v957_v61  ;;  %v1573_v0 = vadd.f32 %v1572_v62, %v1571_v60 }
 0x1dc   : > { %v979_v2 = vmul.f32 %v1573_v0, %v962_v1  ;;  %1659 = vmatprep.mubr.f32.mxu1 %v978_v63 }
 0x1de   : > { %1660 = vmatmul.mubr.f32.gmra.mrb[14].mxu1 %v979_v2 }
 0x279   : > { %v1640_v4 = vpop.f32.mrb[0].mxu1 }
 0x27a   : > { %v1075_v5 = vadd.f32 %v1640_v4, %v1348_v3  ;;  %v1069_v6 = vpop.f32.mrb[1].mxu1 }
 0x27b   : > { %v1070_v7 = vadd.f32 %v1348_v3, %v1069_v6 }
 0x27c   : > { %v1149_v8 = vmax.f32 %v1075_v5, 0.0 }
 0x27d   : > { %v1148_v9 = vmax.f32 %v1070_v7, 0.0 }
 0x27f   : > { %v1451_v10 = vpack.c.bf16 %v1149_v8, %v1148_v9 }
 0x281   : > { %1452 = vst [vmem:[%s2040_s17] sm:$0xff] %v1451_v10   ;;  %v1643_v11 = vpop.f32.mrb[2].mxu1 }
 0x282   : > { %v1085_v12 = vadd.f32 %v1643_v11, %v1348_v3  ;;  %v1079_v13 = vpop.f32.mrb[3].mxu1 }
 0x283   : > { %v1080_v14 = vadd.f32 %v1348_v3, %v1079_v13 }
 0x284   : > { %v1151_v15 = vmax.f32 %v1085_v12, 0.0 }
 0x285   : > { %v1150_v16 = vmax.f32 %v1080_v14, 0.0 }
 0x287   : > { %v1456_v17 = vpack.c.bf16 %v1151_v15, %v1150_v16 }
 0x289   : > { %1503 = vst [vmem:[%s2040_s17 + $0x8] sm:$0xff] %v1456_v17   ;;  %v1646_v18 = vpop.f32.mrb[4].mxu1 }
 0x28a   : > { %v1095_v19 = vadd.f32 %v1646_v18, %v1348_v3  ;;  %v1089_v20 = vpop.f32.mrb[5].mxu1 }
 0x28b   : > { %v1090_v21 = vadd.f32 %v1348_v3, %v1089_v20 }
 0x28c   : > { %v1153_v22 = vmax.f32 %v1095_v19, 0.0 }
 0x28d   : > { %v1152_v23 = vmax.f32 %v1090_v21, 0.0 }
 0x28f   : > { %v1461_v24 = vpack.c.bf16 %v1153_v22, %v1152_v23 }
 0x291   : > { %1504 = vst [vmem:[%s2040_s17 + $0x10] sm:$0xff] %v1461_v24   ;;  %v1649_v25 = vpop.f32.mrb[6].mxu1 }
 0x292   : > { %v1105_v26 = vadd.f32 %v1649_v25, %v1348_v3  ;;  %v1099_v41 = vpop.f32.mrb[7].mxu1 }
 0x293   : > { %v1100_v27 = vadd.f32 %v1348_v3, %v1099_v41 }
 0x294   : > { %v1155_v28 = vmax.f32 %v1105_v26, 0.0 }
 0x295   : > { %v1154_v29 = vmax.f32 %v1100_v27, 0.0 }
 0x297   : > { %v1466_v30 = vpack.c.bf16 %v1155_v28, %v1154_v29 }
 0x299   : > { %1505 = vst [vmem:[%s2040_s17 + $0x18] sm:$0xff] %v1466_v30   ;;  %v1652_v31 = vpop.f32.mrb[8].mxu1 }
 0x29a   : > { %v1115_v32 = vadd.f32 %v1652_v31, %v1348_v3  ;;  %v1109_v33 = vpop.f32.mrb[9].mxu1 }
 0x29b   : > { %v1110_v34 = vadd.f32 %v1348_v3, %v1109_v33 }
 0x29c   : > { %v1157_v35 = vmax.f32 %v1115_v32, 0.0 }
 0x29d   : > { %v1156_v36 = vmax.f32 %v1110_v34, 0.0 }
 0x29f   : > { %v1471_v37 = vpack.c.bf16 %v1157_v35, %v1156_v36 }
 0x2a1   : > { %1506 = vst [vmem:[%s2040_s17 + $0x20] sm:$0xff] %v1471_v37   ;;  %v1655_v38 = vpop.f32.mrb[10].mxu1 }
 0x2a2   : > { %v1125_v39 = vadd.f32 %v1655_v38, %v1348_v3  ;;  %v1119_v40 = vpop.f32.mrb[11].mxu1 }
 0x2a3   : > { %v1120_v42 = vadd.f32 %v1348_v3, %v1119_v40 }
 0x2a4   : > { %v1159_v43 = vmax.f32 %v1125_v39, 0.0 }
 0x2a5   : > { %v1158_v44 = vmax.f32 %v1120_v42, 0.0 }
 0x2a7   : > { %v1476_v45 = vpack.c.bf16 %v1159_v43, %v1158_v44 }
 0x2a9   : > { %1507 = vst [vmem:[%s2040_s17 + $0x28] sm:$0xff] %v1476_v45   ;;  %v1658_v46 = vpop.f32.mrb[12].mxu1 }
 0x2aa   : > { %v1135_v47 = vadd.f32 %v1658_v46, %v1348_v3  ;;  %v1129_v48 = vpop.f32.mrb[13].mxu1 }
 0x2ab   : > { %v1130_v49 = vadd.f32 %v1348_v3, %v1129_v48 }
 0x2ac   : > { %v1161_v50 = vmax.f32 %v1135_v47, 0.0 }
 0x2ad   : > { %v1160_v51 = vmax.f32 %v1130_v49, 0.0 }
 0x2af   : > { %v1481_v52 = vpack.c.bf16 %v1161_v50, %v1160_v51 }
 0x2b1   : > { %1508 = vst [vmem:[%s2040_s17 + $0x30] sm:$0xff] %v1481_v52   ;;  %v1661_v53 = vpop.f32.mrb[14].mxu1 }
 0x2b2   : > { %v1145_v54 = vadd.f32 %v1661_v53, %v1348_v3  ;;  %v1139_v55 = vpop.f32.mrb[15].mxu1 }
 0x2b3   : > { %v1140_v56 = vadd.f32 %v1348_v3, %v1139_v55 }
 0x2b4   : > { %v1163_v57 = vmax.f32 %v1145_v54, 0.0 }
 0x2b5   : > { %v1162_v58 = vmax.f32 %v1140_v56, 0.0 }
 0x2b7   : > { %v1486_v59 = vpack.c.bf16 %v1163_v57, %v1162_v58 }
 0x2b9   : > { %1509 = vst [vmem:[%s2040_s17 + $0x38] sm:$0xff] %v1486_v59  }
 0x2ba PF: > { %s15_s20 = sadd.s32 1, %s1743_s20   ;;  %s2065_s18 = smov %s1739_s19 }
 0x2bb   : > { %p12_p5 = scmp.ge.s32.totalorder %s15_s20, 4   ;;  %s2066_s19 = smov %s2068_s21 }
 0x2bd   :  { %14 = sbr.rel (!%p12_p5) target bundleno = 2 (0x2), region = 81 }

</bundles_post_ra>
